<compile_context>
chip_gen: v7x
topology: tpu7x:2x2x1
jax: 0.10.0
libtpu: 0.0.40
codegen_flags: <defaults>
</compile_context>

<pallas_src>
import math

import jax
import jax.numpy as jnp
from jax import lax
from jax.experimental import pallas as pl
from jax.experimental.pallas import tpu as pltpu


def _round_up(x, m):
    return (x + m - 1) // m * m


def _linear_kernel_single_k(x_ref, w_ref, b_ref, o_ref):
    """One (tm, tn) output tile; the whole K dimension fits in one tile.

    x_ref : (tm, K) bf16
    w_ref : (tn, K) bf16   -- PyTorch (out_features, in_features) layout
    b_ref : (1, tn)  f32
    o_ref : (tm, tn) f32
    """
    acc = lax.dot_general(
        x_ref[...],
        w_ref[...],
        dimension_numbers=(((1,), (1,)), ((), ())),
        preferred_element_type=jnp.float32,
    )
    o_ref[...] = (acc + b_ref[...]).astype(o_ref.dtype)


def _linear_kernel_multi_k(x_ref, w_ref, b_ref, o_ref, acc_ref):
    """One (tm, tn) output tile, accumulating over the K grid axis.

    x_ref : (tm, tk) bf16
    w_ref : (tn, tk) bf16   -- PyTorch (out_features, in_features) layout
    b_ref : (1, tn)  f32
    o_ref : (tm, tn) f32
    acc_ref: (tm, tn) f32 VMEM scratch, resident across the K axis
    """
    k = pl.program_id(2)

    @pl.when(k == 0)
    def _init():
        acc_ref[...] = jnp.zeros_like(acc_ref)

    # Contract the last (K) axis of both operands: x @ W.T on the MXU without
    # ever materializing W.T in HBM.
    acc_ref[...] += lax.dot_general(
        x_ref[...],
        w_ref[...],
        dimension_numbers=(((1,), (1,)), ((), ())),
        preferred_element_type=jnp.float32,
    )

    @pl.when(k == pl.num_programs(2) - 1)
    def _finalize():
        # Bias added exactly once (not once per K step).
        o_ref[...] = (acc_ref[...] + b_ref[...]).astype(o_ref.dtype)


def make_linear_preparation(weight, bias, input_shape, *, out_dtype=jnp.float32):
    """Pack parameters once (pad to tile multiples, cast to bf16) and return the
    forward function. Packing at init time avoids per-call transpose/pad traffic."""
    n, k = weight.shape
    assert k == int(input_shape), "weight must be (output_size, input_shape)"

    # Reduction / output tiles: lane-dense multiples of 128 (unmasked stores),
    # capped so double-buffered bf16 tiles fit comfortably in v7x's 64 MiB VMEM.
    tk = 512 if k >= 512 else _round_up(k, 128)
    tn = 256 if n >= 256 else _round_up(n, 128)
    k_pad = _round_up(k, tk)
    n_pad = _round_up(n, tn)

    w_packed = jnp.pad(weight, ((0, n_pad - n), (0, k_pad - k))).astype(jnp.bfloat16)
    b_packed = jnp.pad(bias.astype(jnp.float32), (0, n_pad - n)).reshape(1, n_pad)

    kt = k_pad // tk  # number of K grid steps (static)

    def forward(x):
        x2d = x.reshape(-1, input_shape)                 # x.view(-1, input_shape)
        m = x2d.shape[0]
        tm = 256 if m >= 256 else _round_up(m, 8)
        m_pad = _round_up(m, tm)
        xp = jnp.pad(x2d, ((0, m_pad - m), (0, k_pad - k))).astype(jnp.bfloat16)

        flops = 2 * m_pad * n_pad * k_pad
        bytes_accessed = (m_pad * k_pad + n_pad * k_pad) * 2 + m_pad * n_pad * 4
        cost = pl.CostEstimate(
            flops=flops, transcendentals=0, bytes_accessed=bytes_accessed
        )

        if kt == 1:
            # Whole reduction fits in one K tile: no accumulator scratch needed.
            out = pl.pallas_call(
                _linear_kernel_single_k,
                out_shape=jax.ShapeDtypeStruct((m_pad, n_pad), out_dtype),
                grid_spec=pltpu.PrefetchScalarGridSpec(
                    num_scalar_prefetch=0,
                    grid=(m_pad // tm, n_pad // tn),
                    in_specs=[
                        pl.BlockSpec((tm, tk), lambda i, j: (i, 0)),   # x tile
                        pl.BlockSpec((tn, tk), lambda i, j: (j, 0)),   # W tile (N,K)
                        pl.BlockSpec((1, tn), lambda i, j: (0, j)),    # bias tile
                    ],
                    out_specs=pl.BlockSpec((tm, tn), lambda i, j: (i, j)),
                ),
                compiler_params=pltpu.CompilerParams(
                    dimension_semantics=("parallel", "parallel"),
                ),
                cost_estimate=cost,
            )(xp, w_packed, b_packed)
        else:
            out = pl.pallas_call(
                _linear_kernel_multi_k,
                out_shape=jax.ShapeDtypeStruct((m_pad, n_pad), out_dtype),
                grid_spec=pltpu.PrefetchScalarGridSpec(
                    num_scalar_prefetch=0,
                    grid=(m_pad // tm, n_pad // tn, kt),
                    in_specs=[
                        pl.BlockSpec((tm, tk), lambda i, j, kk: (i, kk)),   # x tile
                        pl.BlockSpec((tn, tk), lambda i, j, kk: (j, kk)),   # W tile (N,K)
                        pl.BlockSpec((1, tn), lambda i, j, kk: (0, j)),     # bias tile
                    ],
                    out_specs=pl.BlockSpec((tm, tn), lambda i, j, kk: (i, j)),
                    scratch_shapes=[pltpu.VMEM((tm, tn), jnp.float32)],
                ),
                compiler_params=pltpu.CompilerParams(
                    dimension_semantics=("parallel", "parallel", "arbitrary"),
                ),
                cost_estimate=cost,
            )(xp, w_packed, b_packed)

        return out[:m, :n]

    return forward


def init_params(key, input_shape, output_size, dtype=jnp.float32):
    """Deterministic kaiming_uniform_(nonlinearity='relu') weight + zero bias."""
    fan_in = input_shape
    bound = math.sqrt(6.0 / fan_in)  # gain=sqrt(2): bound = sqrt(3)*gain/sqrt(fan_in)
    weight = jax.random.uniform(
        key, (output_size, input_shape), dtype=dtype, minval=-bound, maxval=bound
    )
    bias = jnp.zeros((output_size,), dtype=dtype)
    return weight, bias


def _reference(x2d, weight, bias):
    """Same numerics as the kernel: bf16 inputs, f32 accumulate, f32 bias add."""
    return (
        jnp.dot(
            x2d.astype(jnp.bfloat16),
            weight.astype(jnp.bfloat16).T,
            preferred_element_type=jnp.float32,
        )
        + bias.astype(jnp.float32)
    )


if __name__ == "__main__":
    key = jax.random.PRNGKey(0)
    k_x, k_w, k_x2, k_w2 = jax.random.split(key, 4)

    # --- Small case (matches the module's typical use): single-K-tile path. ---
    input_shape = 32     # in-features of the Linear
    output_size = 16     # out-features of the Linear

    # x.view(-1, 32) -> (8, 32)
    x = jax.random.normal(k_x, (4, 2, input_shape), dtype=jnp.float32)
    weight, bias = init_params(k_w, input_shape, output_size)

    forward = jax.jit(make_linear_preparation(weight, bias, input_shape))
    y = jax.block_until_ready(forward(x))

    x2d = x.reshape(-1, input_shape)
    assert y.shape == (x2d.shape[0], output_size)
    y_ref = _reference(x2d, weight, bias)
    assert jnp.allclose(y, y_ref, atol=1e-2, rtol=1e-2)
    # Loose sanity check against the full-f32 PyTorch semantics.
    y_f32 = x2d @ weight.T + bias
    assert jnp.allclose(y, y_f32, atol=5e-2, rtol=5e-2)

    # --- Larger case: exercises the multi-K-tile accumulator path + N padding. ---
    input_shape2 = 1024
    output_size2 = 320
    x2 = jax.random.normal(k_x2, (4, 4, input_shape2), dtype=jnp.float32)
    weight2, bias2 = init_params(k_w2, input_shape2, output_size2)

    forward2 = jax.jit(make_linear_preparation(weight2, bias2, input_shape2))
    y2 = jax.block_until_ready(forward2(x2))

    x2d2 = x2.reshape(-1, input_shape2)
    assert y2.shape == (x2d2.shape[0], output_size2)
    y2_ref = _reference(x2d2, weight2, bias2)
    assert jnp.allclose(y2, y2_ref, atol=1e-2, rtol=1e-2)

    print("KERNEL_OK")
</pallas_src>

<mosaic_0001>
module attributes {stable_mosaic.version = 11 : i64} {
  func.func @_linear_kernel_single_k(%arg0: i32, %arg1: i32, %arg2: memref<8x128xbf16, #tpu.memory_space<vmem>>, %arg3: memref<128x128xbf16, #tpu.memory_space<vmem>>, %arg4: memref<1x128xf32, #tpu.memory_space<vmem>>, %arg5: memref<8x128xf32, #tpu.memory_space<vmem>>) attributes {dimension_semantics = [#tpu.dimension_semantics<parallel>, #tpu.dimension_semantics<parallel>], iteration_bounds = array<i64: 1, 1>, scalar_prefetch = 0 : i64, scratch_operands = 0 : i64, tpu.core_type = #tpu.core_type<tc>, window_params = [{transform_indices = @transform_0, window_bounds = array<i64: 8, 128>}, {transform_indices = @transform_1, window_bounds = array<i64: 128, 128>}, {transform_indices = @transform_2, window_bounds = array<i64: 1, 128>}, {transform_indices = @transform_3, window_bounds = array<i64: 8, 128>}]} {
    %c0 = arith.constant 0 : index
    %c0_0 = arith.constant 0 : index
    %0 = vector.load %arg2[%c0, %c0_0] : memref<8x128xbf16, #tpu.memory_space<vmem>>, vector<8x128xbf16>
    %c0_1 = arith.constant 0 : index
    %c0_2 = arith.constant 0 : index
    %1 = vector.load %arg3[%c0_1, %c0_2] : memref<128x128xbf16, #tpu.memory_space<vmem>>, vector<128x128xbf16>
    %cst = arith.constant dense<0.000000e+00> : vector<8x128xf32>
    %2 = tpu.matmul %0, %1, %cst {dimension_numbers = #tpu.dot_dimension_numbers<[1], [1], [0], [0], [0, 0, 1, 0], [], []>} : vector<8x128xbf16>, vector<128x128xbf16>, vector<8x128xf32> -> vector<8x128xf32>
    %c0_3 = arith.constant 0 : index
    %c0_4 = arith.constant 0 : index
    %3 = vector.load %arg4[%c0_3, %c0_4] : memref<1x128xf32, #tpu.memory_space<vmem>>, vector<1x128xf32>
    %4 = vector.broadcast %3 : vector<1x128xf32> to vector<8x128xf32>
    %5 = arith.addf %2, %4 : vector<8x128xf32>
    %c0_5 = arith.constant 0 : index
    %c0_6 = arith.constant 0 : index
    %6 = vector.load %arg5[%c0_5, %c0_6] : memref<8x128xf32, #tpu.memory_space<vmem>>, vector<8x128xf32>
    tpu.vector_store %arg5[%c0_5, %c0_6], %5 {strides = array<i32>} : memref<8x128xf32, #tpu.memory_space<vmem>>, vector<8x128xf32>,
    return
  }
  func.func @transform_0(%arg0: i32, %arg1: i32) -> (i32, i32) {
    %c0_i32 = arith.constant 0 : i32
    %c0_i32_0 = arith.constant 0 : i32
    return %arg0, %c0_i32 : i32, i32
  }
  func.func @transform_1(%arg0: i32, %arg1: i32) -> (i32, i32) {
    %c0_i32 = arith.constant 0 : i32
    %c0_i32_0 = arith.constant 0 : i32
    return %arg1, %c0_i32 : i32, i32
  }
  func.func @transform_2(%arg0: i32, %arg1: i32) -> (i32, i32) {
    %c0_i32 = arith.constant 0 : i32
    %c0_i32_0 = arith.constant 0 : i32
    return %c0_i32, %arg1 : i32, i32
  }
  func.func @transform_3(%arg0: i32, %arg1: i32) -> (i32, i32) {
    %c0_i32 = arith.constant 0 : i32
    return %arg0, %arg1 : i32, i32
  }
}

</mosaic_0001>

<bundles_post_ra>
// kernel: forward.1
= control target key start
LH: loop header
LB: loop body
LE: loop exit
PB: predicated region body
PF: predicated region fallthrough
CT: control target
= control target key end

     0   :  { %8 = vsyncpa [#allocation3], 0  ;;  %s314_s0 = inlined_call_operand.vmem [shape: bf16[8,128], index: 0, kind: input, shape index: {}]   ;;  %s315_s1 = inlined_call_operand.hbm [shape: bf16[128,128], index: 1, kind: input, shape index: {}]   ;;  %s316_s2 = inlined_call_operand.vmem [shape: f32[1,128], index: 2, kind: input, shape index: {}]   ;;  %s317_s3 = inlined_call_operand.hbm [shape: f32[8,128], index: 3, kind: output, shape index: {}]  }
   0x1   :  { %9 = vsyncpa [#allocation4], 0  ;;  %s258_s12 = smov [#allocation2]   ;;  %s210_s16 = scalar_lea.hbm %s315_s1, 1024 }
   0x2   :  { %s17_s13 = sshll.u32 %s258_s12, 4  ;;  %p211_p0 = scmp.ne.s32.totalorder %s315_s1, %s210_s16  ;;  %s18_s13 = int_to_ptr.vmem [resolvable:$true] %s17_s13 }
   0x3   :  { %p214_p1 = scmp.lt.u32.totalorder %s210_s16, %s315_s1 }
   0x5   :  { %p216_p2 = pnand %p214_p1, %p211_p0 }
   0x7   :  { %219 = shalt.err (!%p216_p2)
}
   0x8   :  { %s220_s21 = scalar_lea.vmem %s18_s13, 1024  ;;  %p225_p4 = scmp.lt.s32.totalorder %s18_s13, %s18_s13 }
   0x9   :  { %p221_p3 = scmp.ne.s32.totalorder %s18_s13, %s220_s21  ;;  %p226_p5 = scmp.lt.s32.totalorder %s220_s21, %s220_s21 }
   0xb   :  { %p227_p6 = por %p226_p5, %p225_p4 }
   0xd   :  { %p228_p7 = pnand %p227_p6, %p221_p3 }
   0xf   :  { %231 = shalt.err (!%p228_p7)
}
  0x10   :  { %s259_s22 = smov 64   ;;  %s260_s23 = smov 4  }
  0x11   :  { %23 = dma.hbm_to_vmem [thread:$0]  %s315_s1, 1024, %s18_s13, [#allocation3], %s259_s22, %s259_s22, %s260_s23  }
  0x12   :  { %254 = dma.done.wait [#allocation3], 1024  }
  0x13   :  { %255 = vsyncadd [#allocation3], 4294966272  ;;  %v261_v0 = vmov 0.0   ;;  %vm262_vm0 = vmmov 0   ;;  %v202_v1 = vld [vmem:[#allocation2] sm:$0xff]   ;;  %v203_v2 = vld [vmem:[#allocation2 + $0x8] sm:$0xff]  }
  0x14   :  { %176 = vmatprep.subr.bf16.mxu0 %v261_v0  ;;  %192 = vmatprep.mubr.msk.bf16.mxu0 %vm262_vm0, %v261_v0  ;;  %v204_v3 = vld [vmem:[#allocation2 + $0x10] sm:$0xff]   ;;  %v205_v4 = vld [vmem:[#allocation2 + $0x18] sm:$0xff]   ;;  %v206_v5 = vld [vmem:[#allocation2 + $0x20] sm:$0xff]   ;;  %s263_s29 = smov [#allocation5]  }
  0x15   :  { %177 = vmatpush3.bf16.xpose.msra.mxu0 %v202_v1  ;;  %v207_v6 = vld [vmem:[#allocation2 + $0x28] sm:$0xff]   ;;  %v208_v7 = vld [vmem:[#allocation2 + $0x30] sm:$0xff]   ;;  %v209_v8 = vld [vmem:[#allocation2 + $0x38] sm:$0xff]   ;;  %s149_s30 = sshll.u32 %s263_s29, 4  ;;  %s150_s30 = int_to_ptr.vmem [resolvable:$true] %s149_s30 }
  0x16   :  { %178 = vmatprep.subr.bf16.mxu0 %v261_v0  ;;  %v30_v9 = vld [vmem:[%s314_s0] sm:$0xf]  ;;  %s232_s4 = scalar_lea.vmem %s150_s30, 128  ;;  %p237_p9 = scmp.lt.s32.totalorder %s150_s30, %s150_s30 }
  0x17   :  { %v158_v10 = vld [vmem:[%s316_s2] ss:$0 sm:$0xff]  ;;  %p233_p8 = scmp.ne.s32.totalorder %s150_s30, %s232_s4  ;;  %p238_p10 = scmp.lt.s32.totalorder %s232_s4, %s232_s4 }
  0x19   :  { %p239_p11 = por %p238_p10, %p237_p9 }
  0x1b   :  { %p240_p12 = pnand %p239_p11, %p233_p8 }
  0x1d   :  { %179 = vmatpush3.bf16.xpose.msra.mxu0 %v203_v2 }
  0x1e   :  { %180 = vmatprep.subr.bf16.mxu0 %v261_v0 }
  0x25   :  { %181 = vmatpush3.bf16.xpose.msra.mxu0 %v204_v3 }
  0x26   :  { %182 = vmatprep.subr.bf16.mxu0 %v261_v0 }
  0x2d   :  { %183 = vmatpush3.bf16.xpose.msra.mxu0 %v205_v4 }
  0x2e   :  { %184 = vmatprep.subr.bf16.mxu0 %v261_v0 }
  0x35   :  { %185 = vmatpush3.bf16.xpose.msra.mxu0 %v206_v5 }
  0x36   :  { %186 = vmatprep.subr.bf16.mxu0 %v261_v0 }
  0x3d   :  { %187 = vmatpush3.bf16.xpose.msra.mxu0 %v207_v6 }
  0x3e   :  { %188 = vmatprep.subr.bf16.mxu0 %v261_v0 }
  0x45   :  { %189 = vmatpush3.bf16.xpose.msra.mxu0 %v208_v7 }
  0x46   :  { %190 = vmatprep.subr.bf16.mxu0 %v261_v0 }
  0x4d   :  { %191 = vmatpush3.bf16.xpose.msra.mxu0 %v209_v8 }
  0x54   :  { %193 = vmatmul.mubr.bf16.vlgmr.msra.gmra.mrb[0].mxu0 %v30_v9 }
 0x127   :  { %v136_v11 = vpop.f32.mrb[0].mxu0 }
 0x128   :  { %v137_v12 = vadd.f32 %v158_v10, %v136_v11  ;;  %v194_v13 = vpop.f32.mrb[1].mxu0 }
 0x129   :  { %v139_v14 = vpop.f32.mrb[2].mxu0 }
 0x12a   :  { %142 = vst [vmem:[#allocation5] sm:$0xff] %v137_v12  ;;  %v195_v15 = vpop.f32.mrb[3].mxu0 }
 0x12b   :  { %243 = shalt.err (!%p240_p12)
}
 0x12c   :  { %s244_s2 = scalar_lea.hbm %s317_s3, 128 }
 0x12d   :  { %p245_p13 = scmp.ne.s32.totalorder %s317_s3, %s244_s2  ;;  %p248_p0 = scmp.lt.u32.totalorder %s244_s2, %s317_s3 }
 0x12f   :  { %p250_p1 = pnand %p248_p0, %p245_p13 }
 0x131   :  { %253 = shalt.err (!%p250_p1)
}
 0x132   :  { %152 = dma.vmem_to_hbm [thread:$0]  %s150_s30, 128, %s317_s3, [#allocation4]  }
 0x133   :  { %256 = dma.done.wait [#allocation4], 128  }
 0x134   :  { %257 = vsyncadd [#allocation4], 4294967168 }
 0x135   :  { %156 = vsyncpa [#allocation3], 1 }
 0x136   :  { %157 = vsyncpa [#allocation4], 1 }

</bundles_post_ra>
